<compile_context>
chip_gen: v7x
topology: tpu7x:2x2x1
jax: 0.10.0
libtpu: 0.0.40
codegen_flags: <defaults>
</compile_context>

<pallas_src>
import functools

import jax
import jax.numpy as jnp
from jax import lax
from jax.experimental import pallas as pl
from jax.experimental.pallas import tpu as pltpu


def _round_up(x, m):
    return (x + m - 1) // m * m


def _conv_in_lrelu_kernel(p_ref, w_ref, o_ref, sum_ref, ssq_ref, *,
                          inv_s, eps, neg_slope):
    # p_ref   : (1, K_pad, tile_s)  bf16  -- im2col patch tile (K sublanes, S lanes)
    # w_ref   : (Cout, K_pad)       bf16  -- flattened conv weight
    # o_ref   : (1, Cout, S_pad)    f32   -- resident across the S-tile grid axis
    # sum_ref : (Cout, 1)           f32   -- running per-channel sum
    # ssq_ref : (Cout, 1)           f32   -- running per-channel sum of squares
    j = pl.program_id(1)
    n_tiles = pl.num_programs(1)
    tile_s = p_ref.shape[2]

    @pl.when(j == 0)
    def _():
        sum_ref[...] = jnp.zeros_like(sum_ref)
        ssq_ref[...] = jnp.zeros_like(ssq_ref)

    # Conv3d over one spatial tile as an MXU matmul: (Cout, K) @ (K, tile_s).
    y = jnp.dot(w_ref[...], p_ref[0],
                preferred_element_type=jnp.float32)          # (Cout, tile_s) f32

    # One-pass instance-norm statistics (per channel, over spatial lanes).
    sum_ref[...] += jnp.sum(y, axis=1, keepdims=True)
    ssq_ref[...] += jnp.sum(y * y, axis=1, keepdims=True)

    start = pl.multiple_of(j * tile_s, 128)
    o_ref[0, :, pl.ds(start, tile_s)] = y

    # Last S tile: finalize InstanceNorm3d + LeakyReLU(0.2) over the resident block.
    @pl.when(j == n_tiles - 1)
    def _():
        mean = sum_ref[...] * inv_s                          # (Cout, 1)
        var = jnp.maximum(ssq_ref[...] * inv_s - mean * mean, 0.0)
        scale = lax.rsqrt(var + eps)                         # (Cout, 1)

        def norm_tile(t, carry):
            ts = pl.multiple_of(t * tile_s, 128)
            yt = (o_ref[0, :, pl.ds(ts, tile_s)] - mean) * scale
            o_ref[0, :, pl.ds(ts, tile_s)] = jnp.where(yt >= 0, yt, neg_slope * yt)
            return carry

        lax.fori_loop(0, n_tiles, norm_tile, 0)


def _im2col_3d_reflect(x):
    """x: (N, Cin, D, H, W) -> patches (N, Cin*27, D*H*W) with reflect padding."""
    n, cin, d, h, w = x.shape
    xp = jnp.pad(x, ((0, 0), (0, 0), (1, 1), (1, 1), (1, 1)), mode="reflect")
    taps = [
        xp[:, :, kd:kd + d, kh:kh + h, kw:kw + w]
        for kd in range(3) for kh in range(3) for kw in range(3)
    ]
    patches = jnp.stack(taps, axis=2)                # (N, Cin, 27, D, H, W)
    return patches.reshape(n, cin * 27, d * h * w)   # (N, K, S)  tap order (ci,kd,kh,kw)


@jax.jit
def convolution_block_d(x, weight, bias):
    """x: (N, Cin, D, H, W), weight: (Cout, Cin, 3, 3, 3), bias: (Cout,).

    NOTE: the Conv3d bias is mathematically cancelled by InstanceNorm3d
    (affine=False), so it is intentionally not used in the kernel.
    """
    del bias
    n, cin, d, h, w = x.shape
    cout = weight.shape[0]
    s = d * h * w
    k = cin * 27

    k_pad = _round_up(k, 128)
    s_pad = _round_up(s, 128)
    tile_s = next(t for t in (2048, 1024, 512, 256, 128) if s_pad % t == 0)
    n_tiles = s_pad // tile_s

    # im2col in (K, S) layout; zero-pad K and S (zero taps contribute nothing
    # to the conv, and since bias is dropped the padded columns stay exactly 0,
    # so the per-channel statistics are unaffected).
    patches = _im2col_3d_reflect(x)
    patches = jnp.pad(patches, ((0, 0), (0, k_pad - k), (0, s_pad - s)))
    patches = patches.astype(jnp.bfloat16)                         # (N, K_pad, S_pad)

    w_mat = weight.reshape(cout, k).astype(jnp.bfloat16)           # (Cout, K)
    w_mat = jnp.pad(w_mat, ((0, 0), (0, k_pad - k)))               # (Cout, K_pad)

    kernel = functools.partial(_conv_in_lrelu_kernel,
                               inv_s=1.0 / s, eps=1e-5, neg_slope=0.2)

    out_flat = pl.pallas_call(
        kernel,
        out_shape=jax.ShapeDtypeStruct((n, cout, s_pad), jnp.float32),
        grid_spec=pltpu.PrefetchScalarGridSpec(
            num_scalar_prefetch=0,
            grid=(n, n_tiles),
            in_specs=[
                pl.BlockSpec((1, k_pad, tile_s), lambda i, j: (i, 0, j)),
                pl.BlockSpec((cout, k_pad), lambda i, j: (0, 0)),
            ],
            out_specs=pl.BlockSpec((1, cout, s_pad), lambda i, j: (i, 0, 0)),
            scratch_shapes=[pltpu.VMEM((cout, 1), jnp.float32),
                            pltpu.VMEM((cout, 1), jnp.float32)],
        ),
        compiler_params=pltpu.CompilerParams(
            dimension_semantics=("parallel", "arbitrary"),
            vmem_limit_bytes=32 * 1024 * 1024),
    )(patches, w_mat)

    # (N, Cout, S_pad) -> (N, Cout, D, H, W)  (pure reshape, no transpose)
    return out_flat[:, :, :s].reshape(n, cout, d, h, w)


def _reference(x, weight, bias):
    """Pure-JAX reference (lax conv + bias + instance norm + leaky relu)."""
    xp = jnp.pad(x, ((0, 0), (0, 0), (1, 1), (1, 1), (1, 1)), mode="reflect")
    y = lax.conv_general_dilated(
        xp.astype(jnp.float32), weight.astype(jnp.float32),
        window_strides=(1, 1, 1), padding="VALID",
        dimension_numbers=("NCDHW", "OIDHW", "NCDHW"),
        precision=lax.Precision.HIGHEST)
    y = y + bias.reshape(1, -1, 1, 1, 1)
    mean = jnp.mean(y, axis=(2, 3, 4), keepdims=True)
    var = jnp.mean((y - mean) ** 2, axis=(2, 3, 4), keepdims=True)
    y = (y - mean) * lax.rsqrt(var + 1e-5)
    return jnp.where(y >= 0, y, 0.2 * y)


if __name__ == "__main__":
    N, CIN, COUT, D, H, W = 2, 4, 8, 8, 8, 8

    key = jax.random.PRNGKey(0)
    kx, kw, kb = jax.random.split(key, 3)

    x = jax.random.normal(kx, (N, CIN, D, H, W), dtype=jnp.float32)
    fan_in = CIN * 27
    bound = 1.0 / (fan_in ** 0.5)
    weight = jax.random.uniform(kw, (COUT, CIN, 3, 3, 3),
                                minval=-bound, maxval=bound, dtype=jnp.float32)
    bias = jax.random.uniform(kb, (COUT,),
                              minval=-bound, maxval=bound, dtype=jnp.float32)

    out = convolution_block_d(x, weight, bias)
    out = jax.block_until_ready(out)

    ref = _reference(x, weight, bias)
    assert out.shape == (N, COUT, D, H, W)
    # bf16 MXU operands + f32 accumulation; InstanceNorm output is O(1) scale.
    assert jnp.allclose(out, ref, atol=1e-2, rtol=1e-2), \
        float(jnp.max(jnp.abs(out - ref)))

    print("KERNEL_OK")
</pallas_src>

<mosaic_0001>
module attributes {stable_mosaic.version = 11 : i64} {
  func.func @_conv_in_lrelu_kernel(%arg0: i32, %arg1: i32, %arg2: memref<1x128x512xbf16, #tpu.memory_space<vmem>>, %arg3: memref<8x128xbf16, #tpu.memory_space<vmem>>, %arg4: memref<1x8x512xf32, #tpu.memory_space<vmem>>, %arg5: memref<8x1xf32, #tpu.memory_space<vmem>>, %arg6: memref<8x1xf32, #tpu.memory_space<vmem>>) attributes {dimension_semantics = [#tpu.dimension_semantics<parallel>, #tpu.dimension_semantics<arbitrary>], iteration_bounds = array<i64: 2, 1>, scalar_prefetch = 0 : i64, scratch_operands = 2 : i64, tpu.core_type = #tpu.core_type<tc>, window_params = [{transform_indices = @transform_0, window_bounds = array<i64: 1, 128, 512>}, {pipeline_mode = #tpu.pipeline_mode<synchronous>, transform_indices = @transform_1, window_bounds = array<i64: 8, 128>}, {transform_indices = @transform_2, window_bounds = array<i64: 1, 8, 512>}]} {
    %c0_i32 = arith.constant 0 : i32
    %0 = arith.cmpi eq, %arg1, %c0_i32 : i32
    %1 = arith.extui %0 : i1 to i32
    %c0_i32_0 = arith.constant 0 : i32
    %2 = arith.cmpi ne, %1, %c0_i32_0 : i32
    scf.if %2 {
      %cst_19 = arith.constant 0.000000e+00 : f32
      %27 = vector.broadcast %cst_19 : f32 to vector<8x1xf32>
      %c0_20 = arith.constant 0 : index
      %c0_21 = arith.constant 0 : index
      %28 = vector.load %arg5[%c0_20, %c0_21] : memref<8x1xf32, #tpu.memory_space<vmem>>, vector<8x1xf32>
      tpu.vector_store %arg5[%c0_20, %c0_21], %27 {strides = array<i32>} : memref<8x1xf32, #tpu.memory_space<vmem>>, vector<8x1xf32>,
      %cst_22 = arith.constant 0.000000e+00 : f32
      %29 = vector.broadcast %cst_22 : f32 to vector<8x1xf32>
      %c0_23 = arith.constant 0 : index
      %c0_24 = arith.constant 0 : index
      %30 = vector.load %arg6[%c0_23, %c0_24] : memref<8x1xf32, #tpu.memory_space<vmem>>, vector<8x1xf32>
      tpu.vector_store %arg6[%c0_23, %c0_24], %29 {strides = array<i32>} : memref<8x1xf32, #tpu.memory_space<vmem>>, vector<8x1xf32>,
    } else {
    }
    %c0 = arith.constant 0 : index
    %c0_1 = arith.constant 0 : index
    %3 = vector.load %arg3[%c0, %c0_1] : memref<8x128xbf16, #tpu.memory_space<vmem>>, vector<8x128xbf16>
    %c0_2 = arith.constant 0 : index
    %c0_3 = arith.constant 0 : index
    %c0_4 = arith.constant 0 : index
    %4 = vector.load %arg2[%c0_2, %c0_3, %c0_4] : memref<1x128x512xbf16, #tpu.memory_space<vmem>>, vector<1x128x512xbf16>
    %5 = vector.shape_cast %4 : vector<1x128x512xbf16> to vector<128x512xbf16>
    %cst = arith.constant dense<0.000000e+00> : vector<8x512xf32>
    %6 = tpu.matmul %3, %5, %cst {dimension_numbers = #tpu.dot_dimension_numbers<[1], [0], [0], [1], [0, 0, 1, 1], [], []>} : vector<8x128xbf16>, vector<128x512xbf16>, vector<8x512xf32> -> vector<8x512xf32>
    %c0_5 = arith.constant 0 : index
    %c0_6 = arith.constant 0 : index
    %7 = vector.load %arg5[%c0_5, %c0_6] : memref<8x1xf32, #tpu.memory_space<vmem>>, vector<8x1xf32>
    %cst_7 = arith.constant dense<0.000000e+00> : vector<8xf32>
    %8 = vector.multi_reduction <add>, %6, %cst_7 [1] : vector<8x512xf32> to vector<8xf32>
    %9 = vector.shape_cast %8 : vector<8xf32> to vector<8x1xf32>
    %10 = arith.addf %7, %9 : vector<8x1xf32>
    %c0_8 = arith.constant 0 : index
    %c0_9 = arith.constant 0 : index
    %11 = vector.load %arg5[%c0_8, %c0_9] : memref<8x1xf32, #tpu.memory_space<vmem>>, vector<8x1xf32>
    tpu.vector_store %arg5[%c0_8, %c0_9], %10 {strides = array<i32>} : memref<8x1xf32, #tpu.memory_space<vmem>>, vector<8x1xf32>,
    %c0_10 = arith.constant 0 : index
    %c0_11 = arith.constant 0 : index
    %12 = vector.load %arg6[%c0_10, %c0_11] : memref<8x1xf32, #tpu.memory_space<vmem>>, vector<8x1xf32>
    %13 = arith.mulf %6, %6 : vector<8x512xf32>
    %cst_12 = arith.constant dense<0.000000e+00> : vector<8xf32>
    %14 = vector.multi_reduction <add>, %13, %cst_12 [1] : vector<8x512xf32> to vector<8xf32>
    %15 = vector.shape_cast %14 : vector<8xf32> to vector<8x1xf32>
    %16 = arith.addf %12, %15 : vector<8x1xf32>
    %c0_13 = arith.constant 0 : index
    %c0_14 = arith.constant 0 : index
    %17 = vector.load %arg6[%c0_13, %c0_14] : memref<8x1xf32, #tpu.memory_space<vmem>>, vector<8x1xf32>
    tpu.vector_store %arg6[%c0_13, %c0_14], %16 {strides = array<i32>} : memref<8x1xf32, #tpu.memory_space<vmem>>, vector<8x1xf32>,
    %c512_i32 = arith.constant 512 : i32
    %18 = arith.muli %arg1, %c512_i32 : i32
    %19 = tpu.assume_multiple %18, 128 : i32
    %c0_15 = arith.constant 0 : index
    %c0_16 = arith.constant 0 : index
    %20 = arith.index_cast %19 : i32 to index
    %21 = vector.load %arg4[%c0_15, %c0_16, %20] : memref<1x8x512xf32, #tpu.memory_space<vmem>>, vector<1x8x512xf32>
    %22 = vector.shape_cast %21 : vector<1x8x512xf32> to vector<8x512xf32>
    %23 = vector.shape_cast %6 : vector<8x512xf32> to vector<1x8x512xf32>
    tpu.vector_store %arg4[%c0_15, %c0_16, %20], %23 {strides = array<i32>} : memref<1x8x512xf32, #tpu.memory_space<vmem>>, vector<1x8x512xf32>,
    %c0_i32_17 = arith.constant 0 : i32
    %24 = arith.cmpi eq, %arg1, %c0_i32_17 : i32
    %25 = arith.extui %24 : i1 to i32
    %c0_i32_18 = arith.constant 0 : i32
    %26 = arith.cmpi ne, %25, %c0_i32_18 : i32
    scf.if %26 {
      %c0_19 = arith.constant 0 : index
      %c0_20 = arith.constant 0 : index
      %27 = vector.load %arg5[%c0_19, %c0_20] : memref<8x1xf32, #tpu.memory_space<vmem>>, vector<8x1xf32>
      %cst_21 = arith.constant 0.001953125 : f32
      %28 = vector.broadcast %cst_21 : f32 to vector<8x1xf32>
      %29 = arith.mulf %27, %28 : vector<8x1xf32>
      %c0_22 = arith.constant 0 : index
      %c0_23 = arith.constant 0 : index
      %30 = vector.load %arg6[%c0_22, %c0_23] : memref<8x1xf32, #tpu.memory_space<vmem>>, vector<8x1xf32>
      %cst_24 = arith.constant 0.001953125 : f32
      %31 = vector.broadcast %cst_24 : f32 to vector<8x1xf32>
      %32 = arith.mulf %30, %31 : vector<8x1xf32>
      %33 = arith.mulf %29, %29 : vector<8x1xf32>
      %34 = arith.subf %32, %33 : vector<8x1xf32>
      %cst_25 = arith.constant 0.000000e+00 : f32
      %35 = vector.broadcast %cst_25 : f32 to vector<8x1xf32>
      %36 = arith.maximumf %34, %35 : vector<8x1xf32>
      %cst_26 = arith.constant 9.99999974E-6 : f32
      %37 = vector.broadcast %cst_26 : f32 to vector<8x1xf32>
      %38 = arith.addf %36, %37 : vector<8x1xf32>
      %39 = math.rsqrt %38 : vector<8x1xf32>
      %c0_i32_27 = arith.constant 0 : i32
      %c512_i32_28 = arith.constant 512 : i32
      %40 = arith.muli %c0_i32_27, %c512_i32_28 : i32
      %41 = tpu.assume_multiple %40, 128 : i32
      %c0_29 = arith.constant 0 : index
      %c0_30 = arith.constant 0 : index
      %42 = arith.index_cast %41 : i32 to index
      %43 = vector.load %arg4[%c0_29, %c0_30, %42] : memref<1x8x512xf32, #tpu.memory_space<vmem>>, vector<1x8x512xf32>
      %44 = vector.shape_cast %43 : vector<1x8x512xf32> to vector<8x512xf32>
      %45 = vector.broadcast %29 : vector<8x1xf32> to vector<8x512xf32>
      %46 = arith.subf %44, %45 : vector<8x512xf32>
      %47 = vector.broadcast %39 : vector<8x1xf32> to vector<8x512xf32>
      %48 = arith.mulf %46, %47 : vector<8x512xf32>
      %cst_31 = arith.constant 0.000000e+00 : f32
      %49 = vector.broadcast %cst_31 : f32 to vector<8x512xf32>
      %50 = arith.cmpf oge, %48, %49 : vector<8x512xf32>
      %cst_32 = arith.constant 2.000000e-01 : f32
      %51 = vector.broadcast %cst_32 : f32 to vector<8x512xf32>
      %52 = arith.mulf %51, %48 : vector<8x512xf32>
      %53 = arith.select %50, %48, %52 : vector<8x512xi1>, vector<8x512xf32>
      %c0_33 = arith.constant 0 : index
      %c0_34 = arith.constant 0 : index
      %54 = arith.index_cast %41 : i32 to index
      %55 = vector.load %arg4[%c0_33, %c0_34, %54] : memref<1x8x512xf32, #tpu.memory_space<vmem>>, vector<1x8x512xf32>
      %56 = vector.shape_cast %55 : vector<1x8x512xf32> to vector<8x512xf32>
      %57 = vector.shape_cast %53 : vector<8x512xf32> to vector<1x8x512xf32>
      tpu.vector_store %arg4[%c0_33, %c0_34, %54], %57 {strides = array<i32>} : memref<1x8x512xf32, #tpu.memory_space<vmem>>, vector<1x8x512xf32>,
      %c1_i32 = arith.constant 1 : i32
    } else {
    }
    return
  }
  func.func @transform_0(%arg0: i32, %arg1: i32) -> (i32, i32, i32) {
    %c0_i32 = arith.constant 0 : i32
    %c0_i32_0 = arith.constant 0 : i32
    return %arg0, %c0_i32, %arg1 : i32, i32, i32
  }
  func.func @transform_1(%arg0: i32, %arg1: i32) -> (i32, i32) {
    %c0_i32 = arith.constant 0 : i32
    %c0_i32_0 = arith.constant 0 : i32
    %c0_i32_1 = arith.constant 0 : i32
    return %c0_i32, %c0_i32_0 : i32, i32
  }
  func.func @transform_2(%arg0: i32, %arg1: i32) -> (i32, i32, i32) {
    %c0_i32 = arith.constant 0 : i32
    %c0_i32_0 = arith.constant 0 : i32
    %c0_i32_1 = arith.constant 0 : i32
    return %arg0, %c0_i32, %c0_i32_0 : i32, i32, i32
  }
}

</mosaic_0001>

<bundles_post_ra>
// kernel: convolution_block_d.1
= control target key start
LH: loop header
LB: loop body
LE: loop exit
PB: predicated region body
PF: predicated region fallthrough
CT: control target
= control target key end

     0   :  { %s770_s9 = smov 0   ;;  %s772_s10 = smov 0   ;;  %s848_s0 = inlined_call_operand.vmem [shape: bf16[2,128,512], index: 0, kind: input, shape index: {}]   ;;  %s849_s1 = inlined_call_operand.vmem [shape: bf16[8,128], index: 1, kind: input, shape index: {}]   ;;  %s850_s2 = inlined_call_operand.vmem [shape: f32[2,8,512], index: 2, kind: output, shape index: {}]  }
   0x1   :  { %s774_s11 = smov 0  }
   0x2 LB: > { %s24_s12 = sadd.s32 1, %s747_s10  ;;  %p610_p0 = scmp.ge.s32.totalorder %s751_s11, 1  ;;  %s751_s11 = sphi %s774_s11, %s12_s11   ;;  %s747_s10 = sphi %s772_s10, %s852_s10   ;;  %s743_s9 = sphi %s770_s9, %s851_s9  }
   0x3   : > { %p26_p1 = scmp.ge.s32.totalorder %s24_s12, 2  ;;  %p131_p2 = scmp.lt.s32.totalorder %s751_s11, 3 }
   0x5   : > { %s854_s12 = smov (%p26_p1, %s24_s12), 0  ;;  %p132_p3 = pnand %p610_p0, %p131_p2 }
   0x6   : > { %p158_p4 = scmp.lt.s32.totalorder (!%p132_p3), %s743_s9, 1  ;;  %v753_v0 = vmov (!%p132_p3), 0   ;;  %v180_v33 = vld [vmem:[%s849_s1] sm:$0xf] (!%p132_p3)  ;;  %vm177_vm0 = vcmask (!%p132_p3), 7168   ;;  %v754_v34 = vmov (!%p132_p3), 0.0  }
   0x7   : > { %135 = sbr.rel (%p132_p3) target bundleno = 580 (0x244), region = 28  ;;  %405 = vmatprep.mubr.bf16.mxu0 (!%p132_p3), %v753_v0  ;;  %446 = vmatprep.mubr.bf16.mxu1 (!%p132_p3), %v753_v0  ;;  %178 = vst.msk [vmem:[#allocation2] sm:$0xff] (!%p132_p3), %vm177_vm0, %v754_v34  ;;  %179 = vst.msk [vmem:[#allocation3] sm:$0xff] (!%p132_p3), %vm177_vm0, %v754_v34 }
   0x8   : > { %677 = vset.pattern.permute.xlu1 (!%p132_p3), %v753_v0  ;;  %678 = vset.pattern.permute.xlu0 (!%p132_p3), %v753_v0 }
   0xe   : > { %s856_s9 = smov (!%p158_p4, %s743_s9), 1  ;;  %v455_v53 = vld [vmem:[#allocation2] sm:$0xff]  ;;  %v464_v56 = vld [vmem:[#allocation3] sm:$0xff] }
   0xf   : > { %s649_s13 = sshll.u32 %s856_s9, 8  ;;  %s650_s19 = sshll.u32 %s856_s9, 5 }
  0x10   : > { %s794_s16 = scalar_lea.vmem %s848_s0, %s649_s13  ;;  %s171_s22 = scalar_lea.vmem %s850_s2, %s650_s19 }
  0x11   : > { %v679_v1 = vld [vmem:[%s794_s16 + $0x4] ss:$16 sps:$4 sm:$0xff]   ;;  %v681_v2 = vld [vmem:[%s794_s16 + $0xc] ss:$16 sps:$4 sm:$0xff]   ;;  %v683_v3 = vld [vmem:[%s794_s16] ss:$16 sps:$4 sm:$0xff]  }
  0x12   : > { %373 = vmatprep.subr.bf16.mxu0 %v679_v1  ;;  %v684_v4 = vld [vmem:[%s794_s16 + $0x8] ss:$16 sps:$4 sm:$0xff]   ;;  %414 = vmatprep.subr.bf16.mxu1 %v681_v2  ;;  %v685_v5 = vld [vmem:[%s794_s16 + $0x24] ss:$16 sps:$4 sm:$0xff]   ;;  %v687_v6 = vld [vmem:[%s794_s16 + $0x2c] ss:$16 sps:$4 sm:$0xff]  }
  0x13   : > { %374 = vmatpush1.bf16.msra.mxu0 %v683_v3  ;;  %415 = vmatpush1.bf16.msra.mxu1 %v684_v4  ;;  %v689_v7 = vld [vmem:[%s794_s16 + $0x20] ss:$16 sps:$4 sm:$0xff]   ;;  %v690_v8 = vld [vmem:[%s794_s16 + $0x28] ss:$16 sps:$4 sm:$0xff]   ;;  %v691_v9 = vld [vmem:[%s794_s16 + $0x44] ss:$16 sps:$4 sm:$0xff]  }
  0x14   : > { %375 = vmatprep.subr.bf16.mxu0 %v685_v5  ;;  %416 = vmatprep.subr.bf16.mxu1 %v687_v6  ;;  %v693_v10 = vld [vmem:[%s794_s16 + $0x4c] ss:$16 sps:$4 sm:$0xff]   ;;  %v695_v11 = vld [vmem:[%s794_s16 + $0x40] ss:$16 sps:$4 sm:$0xff]   ;;  %v696_v12 = vld [vmem:[%s794_s16 + $0x48] ss:$16 sps:$4 sm:$0xff]  }
  0x15   : > { %v697_v13 = vld [vmem:[%s794_s16 + $0x64] ss:$16 sps:$4 sm:$0xff]   ;;  %v699_v14 = vld [vmem:[%s794_s16 + $0x6c] ss:$16 sps:$4 sm:$0xff]   ;;  %v701_v15 = vld [vmem:[%s794_s16 + $0x60] ss:$16 sps:$4 sm:$0xff]  }
  0x16   : > { %v702_v16 = vld [vmem:[%s794_s16 + $0x68] ss:$16 sps:$4 sm:$0xff]   ;;  %v703_v17 = vld [vmem:[%s794_s16 + $0x84] ss:$16 sps:$4 sm:$0xff]   ;;  %v705_v18 = vld [vmem:[%s794_s16 + $0x8c] ss:$16 sps:$4 sm:$0xff]  }
  0x17   : > { %376 = vmatpush1.bf16.msra.mxu0 %v689_v7  ;;  %417 = vmatpush1.bf16.msra.mxu1 %v690_v8  ;;  %v707_v19 = vld [vmem:[%s794_s16 + $0x80] ss:$16 sps:$4 sm:$0xff]   ;;  %v708_v20 = vld [vmem:[%s794_s16 + $0x88] ss:$16 sps:$4 sm:$0xff]   ;;  %v709_v21 = vld [vmem:[%s794_s16 + $0xa4] ss:$16 sps:$4 sm:$0xff]  }
  0x18   : > { %377 = vmatprep.subr.bf16.mxu0 %v691_v9  ;;  %418 = vmatprep.subr.bf16.mxu1 %v693_v10  ;;  %v711_v22 = vld [vmem:[%s794_s16 + $0xac] ss:$16 sps:$4 sm:$0xff]   ;;  %v713_v23 = vld [vmem:[%s794_s16 + $0xa0] ss:$16 sps:$4 sm:$0xff]   ;;  %v714_v24 = vld [vmem:[%s794_s16 + $0xa8] ss:$16 sps:$4 sm:$0xff]  }
  0x19   : > { %v715_v25 = vld [vmem:[%s794_s16 + $0xc4] ss:$16 sps:$4 sm:$0xff]   ;;  %v717_v26 = vld [vmem:[%s794_s16 + $0xcc] ss:$16 sps:$4 sm:$0xff]   ;;  %v719_v27 = vld [vmem:[%s794_s16 + $0xc0] ss:$16 sps:$4 sm:$0xff]  }
  0x1a   : > { %v720_v28 = vld [vmem:[%s794_s16 + $0xc8] ss:$16 sps:$4 sm:$0xff]   ;;  %v721_v29 = vld [vmem:[%s794_s16 + $0xe4] ss:$16 sps:$4 sm:$0xff]   ;;  %v723_v30 = vld [vmem:[%s794_s16 + $0xec] ss:$16 sps:$4 sm:$0xff]  }
  0x1b   : > { %378 = vmatpush1.bf16.msra.mxu0 %v695_v11  ;;  %419 = vmatpush1.bf16.msra.mxu1 %v696_v12  ;;  %v725_v31 = vld [vmem:[%s794_s16 + $0xe0] ss:$16 sps:$4 sm:$0xff]   ;;  %v726_v32 = vld [vmem:[%s794_s16 + $0xe8] ss:$16 sps:$4 sm:$0xff]  }
  0x1c   : > { %379 = vmatprep.subr.bf16.mxu0 %v697_v13  ;;  %420 = vmatprep.subr.bf16.mxu1 %v699_v14 }
  0x1f   : > { %380 = vmatpush1.bf16.msra.mxu0 %v701_v15  ;;  %421 = vmatpush1.bf16.msra.mxu1 %v702_v16 }
  0x20   : > { %381 = vmatprep.subr.bf16.mxu0 %v703_v17  ;;  %422 = vmatprep.subr.bf16.mxu1 %v705_v18 }
  0x23   : > { %382 = vmatpush1.bf16.msra.mxu0 %v707_v19  ;;  %423 = vmatpush1.bf16.msra.mxu1 %v708_v20 }
  0x24   : > { %383 = vmatprep.subr.bf16.mxu0 %v709_v21  ;;  %424 = vmatprep.subr.bf16.mxu1 %v711_v22 }
  0x27   : > { %384 = vmatpush1.bf16.msra.mxu0 %v713_v23  ;;  %425 = vmatpush1.bf16.msra.mxu1 %v714_v24 }
  0x28   : > { %385 = vmatprep.subr.bf16.mxu0 %v715_v25  ;;  %426 = vmatprep.subr.bf16.mxu1 %v717_v26 }
  0x2b   : > { %386 = vmatpush1.bf16.msra.mxu0 %v719_v27  ;;  %427 = vmatpush1.bf16.msra.mxu1 %v720_v28 }
  0x2c   : > { %387 = vmatprep.subr.bf16.mxu0 %v721_v29  ;;  %428 = vmatprep.subr.bf16.mxu1 %v723_v30 }
  0x2f   : > { %388 = vmatpush1.bf16.msra.mxu0 %v725_v31  ;;  %429 = vmatpush1.bf16.msra.mxu1 %v726_v32 }
  0x32   : > { %406 = vmatmul.mubr.bf16.vlgmr.msra.gmra.mrb[0].mxu0 %v180_v33  ;;  %447 = vmatmul.mubr.bf16.vlgmr.msra.gmra.mrb[0].mxu1 %v180_v33 }
 0x105   : > { %v407_v35 = vpop.f32.mrb[0].mxu0  ;;  %v448_v36 = vpop.f32.mrb[0].mxu1 }
 0x106   : > { %v465_v37 = vmul.f32 %v407_v35, %v407_v35  ;;  %v409_v38 = vpop.f32.mrb[1].mxu0  ;;  %v450_v39 = vpop.f32.mrb[1].mxu1  ;;  %v467_v40 = vmul.f32 %v448_v36, %v448_v36 }
 0x107   : > { %v456_v41 = vadd.f32 %v409_v38, %v407_v35  ;;  %v466_v42 = vmul.f32 %v409_v38, %v409_v38  ;;  %v411_v43 = vpop.f32.mrb[2].mxu0  ;;  %v452_v44 = vpop.f32.mrb[2].mxu1  ;;  %v468_v50 = vmul.f32 %v450_v39, %v450_v39 }
 0x108   : > { %v412_v45 = vpop.f32.mrb[3].mxu0  ;;  %v453_v46 = vpop.f32.mrb[3].mxu1 }
 0x109   : > { %v457_v47 = vadd.f32 %v456_v41, %v448_v36  ;;  %v469_v48 = vadd.f32 %v466_v42, %v465_v37 }
 0x10b   : > { %v458_v49 = vadd.f32 %v457_v47, %v450_v39  ;;  %v470_v51 = vadd.f32 %v469_v48, %v467_v40 }
 0x10d   : > { %459 = vadd.xlane.f32.xlu0 %v458_v49  ;;  %v471_v52 = vadd.f32 %v470_v51, %v468_v50 }
 0x111   : > { %472 = vadd.xlane.f32.xlu0 %v471_v52 }
 0x19a   : > { %v460_v54 = vpop.xlane.xlu0 %459 }
 0x19b   : > { %v461_v55 = vadd.f32 %v460_v54, %v455_v53 }
 0x19d   : > { %463 = vst.msk [vmem:[#allocation2] sm:$0xff] %vm177_vm0, %v461_v55 }
 0x19e   : > { %v473_v57 = vpop.xlane.xlu0 %472 }
 0x19f   : > { %v474_v58 = vadd.f32 %v473_v57, %v464_v56 }
 0x1a1   : > { %475 = vst.msk [vmem:[#allocation3] sm:$0xff] %vm177_vm0, %v474_v58 }
 0x1a4   : > { %v488_v59 = vld [vmem:[#allocation2] sm:$0xff] }
 0x1a5   : > { %v489_v60 = vmul.f32 0.001953125, %v488_v59 }
 0x1a7   : > { %503 = vperm.xlu1 %677, %v489_v60   ;;  %v492_v63 = vmul.f32 %v489_v60, %v489_v60 }
 0x1a8   : > { %v490_v61 = vld [vmem:[#allocation3] sm:$0xff] }
 0x1a9   : > { %v491_v62 = vmul.f32 0.001953125, %v490_v61 }
 0x1ab   : > { %v493_v0 = vsub.f32 %v491_v62, %v492_v63 }
 0x1ad   : > { %v494_v1 = vmax.f32 %v493_v0, 0.0 }
 0x1af   : > { %v495_v2 = vadd.f32 1e-05, %v494_v1 }
 0x1b1   : > { %727 = vrsqrt.f32 %v495_v2 }
 0x1bb   : > { %v728_v3 = vpop.eup %727 }
 0x1bc   : > { %512 = vperm.xlu1 %677, %v728_v3  }
 0x226   : > { %v504_v4 = vpop.permute.xlu1 %503 }
 0x227   : > { %v506_v5 = vsub.f32 %v407_v35, %v504_v4  ;;  %v507_v6 = vsub.f32 %v409_v38, %v504_v4  ;;  %v508_v7 = vsub.f32 %v448_v36, %v504_v4  ;;  %v509_v8 = vsub.f32 %v450_v39, %v504_v4 }
 0x23b   : > { %v513_v9 = vpop.permute.xlu1 %512 }
 0x23c   : > { %v515_v10 = vmul.f32 %v513_v9, %v506_v5  ;;  %v516_v11 = vmul.f32 %v513_v9, %v507_v6  ;;  %v517_v12 = vmul.f32 %v513_v9, %v508_v7  ;;  %v518_v13 = vmul.f32 %v513_v9, %v509_v8 }
 0x23e   : > { %vm519_vm1 = vcmp.ge.f32.partialorder %v515_v10, 0.0  ;;  %vm520_vm2 = vcmp.ge.f32.partialorder %v516_v11, 0.0  ;;  %vm521_vm3 = vcmp.ge.f32.partialorder %v517_v12, 0.0  ;;  %vm522_vm4 = vcmp.ge.f32.partialorder %v518_v13, 0.0 }
 0x23f   : > { %v523_v14 = vmul.f32 0.2, %v515_v10  ;;  %v524_v15 = vmul.f32 0.2, %v516_v11  ;;  %v525_v16 = vmul.f32 0.2, %v517_v12 }
 0x240   : > { %v526_v17 = vmul.f32 0.2, %v518_v13 }
 0x241   : > { %v527_v18 = vsel %vm519_vm1, %v515_v10, %v523_v14  ;;  %v528_v19 = vsel %vm520_vm2, %v516_v11, %v524_v15  ;;  %v529_v20 = vsel %vm521_vm3, %v517_v12, %v525_v16 }
 0x242   : > { %v530_v21 = vsel %vm522_vm4, %v518_v13, %v526_v17  ;;  %531 = vst [vmem:[%s171_s22] sm:$0xff] %v527_v18  ;;  %532 = vst [vmem:[%s171_s22 + $0x8] sm:$0xff] %v528_v19 }
 0x243   : > { %533 = vst [vmem:[%s171_s22 + $0x10] sm:$0xff] %v529_v20  ;;  %534 = vst [vmem:[%s171_s22 + $0x18] sm:$0xff] %v530_v21 }
 0x244 PF: > { %s12_s11 = sadd.s32 1, %s751_s11   ;;  %s851_s9 = smov %s747_s10 }
 0x245   : > { %p9_p5 = scmp.ge.s32.totalorder %s12_s11, 4   ;;  %s852_s10 = smov %s854_s12 }
 0x247   :  { %11 = sbr.rel (!%p9_p5) target bundleno = 2 (0x2), region = 67 }

</bundles_post_ra>
